<compile_context>
chip_gen: v5e
topology: v5e:2x2
jax: 0.10.0
libtpu: 0.0.40
codegen_flags: <defaults>
</compile_context>

<pallas_src>
import math
import functools

import jax
import jax.numpy as jnp
from jax.experimental import pallas as pl
from jax.experimental.pallas import tpu as pltpu

_LANE = 128
_SUBLANE = 8


def _round_up(x, m):
    return ((x + m - 1) // m) * m


def _cdiv(a, b):
    return (a + b - 1) // b


def _attn_kernel(sub_ref, rev_ref, wq_ref, bq_ref, wk_rep_ref, bk_ref, g_ref,
                 out_ref, *, inv_norm):
    # Q projection (MXU), 1/sqrt(A) folded in. Upcast fused into the load.
    sub = sub_ref[...].astype(jnp.float32)                                   # (TB, T)
    q = jnp.dot(sub, wq_ref[...], preferred_element_type=jnp.float32) + bq_ref[...]
    q = q * jnp.float32(inv_norm)                                            # (TB, A)

    # qk replicated across L via the pre-tiled weight (MXU; no in-kernel lane tile):
    #   qk_rep[b, l*T + t] = sum_a q[b, a] * W_K[a, t]
    qk_rep = jnp.dot(q, wk_rep_ref[...], preferred_element_type=jnp.float32)  # (TB, L*T)
    c = jnp.sum(q * bk_ref[...], axis=-1, keepdims=True)                      # (TB, 1)

    # Streamed, lane-dense reviewer block; upcast fused into the read.
    rev = rev_ref[...].astype(jnp.float32)                                    # (TB, L*T)
    prod = rev * qk_rep                                                       # VPU (hidden)
    # Group-sum over each T-chunk via a constant block matrix G (MXU, not XLU).
    e = jnp.dot(prod, g_ref[...], preferred_element_type=jnp.float32) + c     # (TB, L)

    # Numerically-stable softmax over the (full, untiled) sequence axis.
    m = jnp.max(e, axis=-1, keepdims=True)
    p = jnp.exp(e - m)
    denom = jnp.sum(p, axis=-1, keepdims=True)
    out_ref[...] = p * pl.reciprocal(denom, approx=True)                      # (TB, L)


def attention_module_forward(submitter_emb, reviewer_emb, params):
    """JAX/Pallas equivalent of Attention_Module.forward.

    submitter_emb: (B, T) float32 or bfloat16
    reviewer_emb : (B, L, T) float32 or bfloat16
    returns      : (B, 1, L) float32 softmax attention scores
    """
    B, T = submitter_emb.shape
    _, L, T2 = reviewer_emb.shape
    assert T2 == T
    A = params["wq"].shape[0]          # PyTorch Linear weight is (out, in)
    LT = L * T

    f32 = jnp.float32
    # Glue (all tiny, resident across grid steps):
    wq_t = params["wq"].astype(f32).T                               # (T, A)
    wk_rep = jnp.tile(params["wk"].astype(f32), (1, L))             # (A, L*T)
    bq = params["bq"].astype(f32).reshape(1, A)
    bk = params["bk"].astype(f32).reshape(1, A)
    g = jnp.kron(jnp.eye(L, dtype=f32), jnp.ones((T, 1), dtype=f32))  # (L*T, L)

    # Free, contiguous reshape -> lane-dense streamed layout.
    rev_flat = reviewer_emb.reshape(B, LT)

    isz_rev = reviewer_emb.dtype.itemsize
    isz_sub = submitter_emb.dtype.itemsize

    # ---- VMEM budget with padded-tile math (lane=128, sublane>=8) ----
    try:
        phys_vmem = int(pltpu.get_tpu_info().vmem_capacity_bytes)
    except Exception:
        phys_vmem = 64 * 1024 * 1024           # v7x per-TC lower bound (v5e/v6e: 128 MiB)
    vmem_limit = min(phys_vmem * 3 // 4, 96 * 1024 * 1024)
    budget = int(vmem_limit * 0.7)             # leave compiler headroom

    lt_pad = _round_up(LT, _LANE)
    per_row = (2 * lt_pad * isz_rev                      # reviewer block (double-buffered)
               + 2 * _round_up(T, _LANE) * isz_sub       # submitter block
               + 2 * _round_up(L, _LANE) * 4             # output block
               + 3 * lt_pad * 4)                         # f32 temps (upcast, qk_rep, prod)
    fixed = 2 * (_round_up(T, _SUBLANE) * _round_up(A, _LANE) * 4      # W_Q^T
                 + _round_up(A, _SUBLANE) * lt_pad * 4                 # W_K_rep
                 + lt_pad * _round_up(L, _LANE) * 4                    # G
                 + 2 * _SUBLANE * _LANE * 4)                           # biases
    avail = budget - fixed
    if avail < 16 * per_row:
        # TODO(synk): for very large L*num_topics a single 16-row block (or the
        # resident tiled W_K) no longer fits VMEM; would need an L-tiled two-pass /
        # online-softmax variant, not implemented here.
        raise ValueError(
            f"Attention block does not fit VMEM (need {16 * per_row + fixed} B, "
            f"budget {budget} B); reduce L*num_topics.")

    tb_cap = (avail // per_row) // 16 * 16
    # >=2 grid steps when B > 16 so v7x's two TensorCores both get work.
    TB = max(16, min(tb_cap, _round_up(_cdiv(B, 2), 16), 4096))
    grid = _cdiv(B, TB)

    kernel = functools.partial(_attn_kernel, inv_norm=1.0 / math.sqrt(A))

    cost = pl.CostEstimate(
        flops=int(2 * B * T * A + 2 * B * A * LT + B * LT + 2 * B * LT * L),
        transcendentals=int(B * L),
        bytes_accessed=int(B * T * isz_sub + B * LT * isz_rev + B * L * 4
                           + (T * A + A * LT + 2 * A + LT * L) * 4),
    )

    out = pl.pallas_call(
        kernel,
        out_shape=jax.ShapeDtypeStruct((B, L), jnp.float32),
        grid_spec=pltpu.PrefetchScalarGridSpec(
            num_scalar_prefetch=0,
            grid=(grid,),
            in_specs=[
                pl.BlockSpec((TB, T), lambda i: (i, 0)),    # submitter tile
                pl.BlockSpec((TB, LT), lambda i: (i, 0)),   # reviewer tile (streamed, lane-dense)
                pl.BlockSpec((T, A), lambda i: (0, 0)),     # W_Q^T   (resident)
                pl.BlockSpec((1, A), lambda i: (0, 0)),     # b_Q     (resident)
                pl.BlockSpec((A, LT), lambda i: (0, 0)),    # W_K rep (resident)
                pl.BlockSpec((1, A), lambda i: (0, 0)),     # b_K     (resident)
                pl.BlockSpec((LT, L), lambda i: (0, 0)),    # group-sum G (resident)
            ],
            out_specs=pl.BlockSpec((TB, L), lambda i: (i, 0)),
        ),
        compiler_params=pltpu.CompilerParams(
            dimension_semantics=("parallel",),
            vmem_limit_bytes=int(vmem_limit),
        ),
        cost_estimate=cost,
    )(submitter_emb, rev_flat, wq_t, bq, wk_rep, bk, g)

    return out[:, None, :]  # (B, 1, L), matching torch.softmax(e, dim=2)


def init_params(key, num_topics, attention_matrix_size):
    """Deterministic synthetic init mimicking nn.Linear's uniform(-1/sqrt(in), 1/sqrt(in))."""
    kq_w, kq_b, kk_w, kk_b = jax.random.split(key, 4)
    bound = 1.0 / math.sqrt(num_topics)
    shape_w = (attention_matrix_size, num_topics)  # PyTorch (out, in)
    return {
        "wq": jax.random.uniform(kq_w, shape_w, jnp.float32, -bound, bound),
        "bq": jax.random.uniform(kq_b, (attention_matrix_size,), jnp.float32, -bound, bound),
        "wk": jax.random.uniform(kk_w, shape_w, jnp.float32, -bound, bound),
        "bk": jax.random.uniform(kk_b, (attention_matrix_size,), jnp.float32, -bound, bound),
        # TODO(synk): W_V exists in __init__ but is unused in forward; omitted here.
    }


def _reference_forward(submitter_emb, reviewer_emb, params):
    """Pure-JAX reference mirroring the PyTorch forward, for validation."""
    A = params["wq"].shape[0]
    q = submitter_emb @ params["wq"].T + params["bq"]                  # (B, A)
    k = reviewer_emb @ params["wk"].T + params["bk"]                   # (B, L, A)
    e = jnp.einsum("ba,bla->bl", q, k) / math.sqrt(A)                  # (B, L)
    return jax.nn.softmax(e, axis=-1)[:, None, :]                      # (B, 1, L)


if __name__ == "__main__":
    B = 2           # batch
    L = 8           # reviewer sequence length (number of reviewer papers)
    num_topics = 32
    attention_matrix_size = 32

    key = jax.random.PRNGKey(0)
    k_sub, k_rev, k_params = jax.random.split(key, 3)

    submitter_emb = jax.random.normal(k_sub, (B, num_topics), jnp.float32)
    reviewer_emb = jax.random.normal(k_rev, (B, L, num_topics), jnp.float32)
    params = init_params(k_params, num_topics, attention_matrix_size)

    ref = _reference_forward(submitter_emb, reviewer_emb, params)

    # f32 inputs (tolerance covers approx-reciprocal softmax normalization).
    out = attention_module_forward(submitter_emb, reviewer_emb, params)
    out = jax.block_until_ready(out)
    assert out.shape == (B, 1, L), out.shape
    assert jnp.allclose(out, ref, atol=5e-3, rtol=5e-3), "f32 mismatch vs reference"

    # bf16 inputs (streamed bytes halved; upcast happens inside the kernel).
    out_bf16 = attention_module_forward(submitter_emb.astype(jnp.bfloat16),
                                        reviewer_emb.astype(jnp.bfloat16), params)
    out_bf16 = jax.block_until_ready(out_bf16)
    assert out_bf16.shape == (B, 1, L), out_bf16.shape
    assert jnp.allclose(out_bf16, ref, atol=5e-2, rtol=5e-2), "bf16 mismatch vs reference"

    print("KERNEL_OK")
</pallas_src>

<mosaic_0001>
module attributes {stable_mosaic.version = 11 : i64} {
  func.func @_attn_kernel(%arg0: i32, %arg1: memref<16x32xf32, #tpu.memory_space<vmem>>, %arg2: memref<16x256xf32, #tpu.memory_space<vmem>>, %arg3: memref<32x32xf32, #tpu.memory_space<vmem>>, %arg4: memref<1x32xf32, #tpu.memory_space<vmem>>, %arg5: memref<32x256xf32, #tpu.memory_space<vmem>>, %arg6: memref<1x32xf32, #tpu.memory_space<vmem>>, %arg7: memref<256x8xf32, #tpu.memory_space<vmem>>, %arg8: memref<16x8xf32, #tpu.memory_space<vmem>>) attributes {dimension_semantics = [#tpu.dimension_semantics<parallel>], iteration_bounds = array<i64: 1>, scalar_prefetch = 0 : i64, scratch_operands = 0 : i64, tpu.core_type = #tpu.core_type<tc>, window_params = [{transform_indices = @transform_0, window_bounds = array<i64: 16, 32>}, {transform_indices = @transform_1, window_bounds = array<i64: 16, 256>}, {pipeline_mode = #tpu.pipeline_mode<synchronous>, transform_indices = @transform_2, window_bounds = array<i64: 32, 32>}, {pipeline_mode = #tpu.pipeline_mode<synchronous>, transform_indices = @transform_3, window_bounds = array<i64: 1, 32>}, {pipeline_mode = #tpu.pipeline_mode<synchronous>, transform_indices = @transform_4, window_bounds = array<i64: 32, 256>}, {pipeline_mode = #tpu.pipeline_mode<synchronous>, transform_indices = @transform_5, window_bounds = array<i64: 1, 32>}, {pipeline_mode = #tpu.pipeline_mode<synchronous>, transform_indices = @transform_6, window_bounds = array<i64: 256, 8>}, {transform_indices = @transform_7, window_bounds = array<i64: 16, 8>}]} {
    %c0 = arith.constant 0 : index
    %c0_0 = arith.constant 0 : index
    %0 = vector.load %arg1[%c0, %c0_0] : memref<16x32xf32, #tpu.memory_space<vmem>>, vector<16x32xf32>
    %c0_1 = arith.constant 0 : index
    %c0_2 = arith.constant 0 : index
    %1 = vector.load %arg3[%c0_1, %c0_2] : memref<32x32xf32, #tpu.memory_space<vmem>>, vector<32x32xf32>
    %cst = arith.constant dense<0.000000e+00> : vector<16x32xf32>
    %2 = tpu.matmul %0, %1, %cst {dimension_numbers = #tpu.dot_dimension_numbers<[1], [0], [0], [1], [0, 0, 1, 1], [], []>} : vector<16x32xf32>, vector<32x32xf32>, vector<16x32xf32> -> vector<16x32xf32>
    %c0_3 = arith.constant 0 : index
    %c0_4 = arith.constant 0 : index
    %3 = vector.load %arg4[%c0_3, %c0_4] : memref<1x32xf32, #tpu.memory_space<vmem>>, vector<1x32xf32>
    %4 = vector.broadcast %3 : vector<1x32xf32> to vector<16x32xf32>
    %5 = arith.addf %2, %4 : vector<16x32xf32>
    %cst_5 = arith.constant 0.176776692 : f32
    %6 = vector.broadcast %cst_5 : f32 to vector<16x32xf32>
    %7 = arith.mulf %5, %6 : vector<16x32xf32>
    %c0_6 = arith.constant 0 : index
    %c0_7 = arith.constant 0 : index
    %8 = vector.load %arg5[%c0_6, %c0_7] : memref<32x256xf32, #tpu.memory_space<vmem>>, vector<32x256xf32>
    %cst_8 = arith.constant dense<0.000000e+00> : vector<16x256xf32>
    %9 = tpu.matmul %7, %8, %cst_8 {dimension_numbers = #tpu.dot_dimension_numbers<[1], [0], [0], [1], [0, 0, 1, 1], [], []>} : vector<16x32xf32>, vector<32x256xf32>, vector<16x256xf32> -> vector<16x256xf32>
    %c0_9 = arith.constant 0 : index
    %c0_10 = arith.constant 0 : index
    %10 = vector.load %arg6[%c0_9, %c0_10] : memref<1x32xf32, #tpu.memory_space<vmem>>, vector<1x32xf32>
    %11 = vector.broadcast %10 : vector<1x32xf32> to vector<16x32xf32>
    %12 = arith.mulf %7, %11 : vector<16x32xf32>
    %cst_11 = arith.constant dense<0.000000e+00> : vector<16xf32>
    %13 = vector.multi_reduction <add>, %12, %cst_11 [1] : vector<16x32xf32> to vector<16xf32>
    %14 = vector.shape_cast %13 : vector<16xf32> to vector<16x1xf32>
    %c0_12 = arith.constant 0 : index
    %c0_13 = arith.constant 0 : index
    %15 = vector.load %arg2[%c0_12, %c0_13] : memref<16x256xf32, #tpu.memory_space<vmem>>, vector<16x256xf32>
    %16 = arith.mulf %15, %9 : vector<16x256xf32>
    %c0_14 = arith.constant 0 : index
    %c0_15 = arith.constant 0 : index
    %17 = vector.load %arg7[%c0_14, %c0_15] : memref<256x8xf32, #tpu.memory_space<vmem>>, vector<256x8xf32>
    %cst_16 = arith.constant dense<0.000000e+00> : vector<16x8xf32>
    %18 = tpu.matmul %16, %17, %cst_16 {dimension_numbers = #tpu.dot_dimension_numbers<[1], [0], [0], [1], [0, 0, 1, 1], [], []>} : vector<16x256xf32>, vector<256x8xf32>, vector<16x8xf32> -> vector<16x8xf32>
    %19 = vector.broadcast %14 : vector<16x1xf32> to vector<16x8xf32>
    %20 = arith.addf %18, %19 : vector<16x8xf32>
    %cst_17 = arith.constant dense<0xFF800000> : vector<16xf32>
    %21 = vector.multi_reduction <maximumf>, %20, %cst_17 [1] : vector<16x8xf32> to vector<16xf32>
    %22 = vector.shape_cast %21 : vector<16xf32> to vector<16x1xf32>
    %23 = vector.broadcast %22 : vector<16x1xf32> to vector<16x8xf32>
    %24 = arith.subf %20, %23 : vector<16x8xf32>
    %25 = math.exp %24 : vector<16x8xf32>
    %cst_18 = arith.constant dense<0.000000e+00> : vector<16xf32>
    %26 = vector.multi_reduction <add>, %25, %cst_18 [1] : vector<16x8xf32> to vector<16xf32>
    %27 = vector.shape_cast %26 : vector<16xf32> to vector<16x1xf32>
    %28 = tpu.reciprocal %27 {approx = true} : vector<16x1xf32> -> vector<16x1xf32>
    %29 = vector.broadcast %28 : vector<16x1xf32> to vector<16x8xf32>
    %30 = arith.mulf %25, %29 : vector<16x8xf32>
    %c0_19 = arith.constant 0 : index
    %c0_20 = arith.constant 0 : index
    %31 = vector.load %arg8[%c0_19, %c0_20] : memref<16x8xf32, #tpu.memory_space<vmem>>, vector<16x8xf32>
    tpu.vector_store %arg8[%c0_19, %c0_20], %30 {strides = array<i32>} : memref<16x8xf32, #tpu.memory_space<vmem>>, vector<16x8xf32>,
    return
  }
  func.func @transform_0(%arg0: i32) -> (i32, i32) {
    %c0_i32 = arith.constant 0 : i32
    %c0_i32_0 = arith.constant 0 : i32
    return %arg0, %c0_i32 : i32, i32
  }
  func.func @transform_1(%arg0: i32) -> (i32, i32) {
    %c0_i32 = arith.constant 0 : i32
    %c0_i32_0 = arith.constant 0 : i32
    return %arg0, %c0_i32 : i32, i32
  }
  func.func @transform_2(%arg0: i32) -> (i32, i32) {
    %c0_i32 = arith.constant 0 : i32
    %c0_i32_0 = arith.constant 0 : i32
    %c0_i32_1 = arith.constant 0 : i32
    return %c0_i32, %c0_i32_0 : i32, i32
  }
  func.func @transform_3(%arg0: i32) -> (i32, i32) {
    %c0_i32 = arith.constant 0 : i32
    %c0_i32_0 = arith.constant 0 : i32
    %c0_i32_1 = arith.constant 0 : i32
    return %c0_i32, %c0_i32_0 : i32, i32
  }
  func.func @transform_4(%arg0: i32) -> (i32, i32) {
    %c0_i32 = arith.constant 0 : i32
    %c0_i32_0 = arith.constant 0 : i32
    %c0_i32_1 = arith.constant 0 : i32
    return %c0_i32, %c0_i32_0 : i32, i32
  }
  func.func @transform_5(%arg0: i32) -> (i32, i32) {
    %c0_i32 = arith.constant 0 : i32
    %c0_i32_0 = arith.constant 0 : i32
    %c0_i32_1 = arith.constant 0 : i32
    return %c0_i32, %c0_i32_0 : i32, i32
  }
  func.func @transform_6(%arg0: i32) -> (i32, i32) {
    %c0_i32 = arith.constant 0 : i32
    %c0_i32_0 = arith.constant 0 : i32
    %c0_i32_1 = arith.constant 0 : i32
    return %c0_i32, %c0_i32_0 : i32, i32
  }
  func.func @transform_7(%arg0: i32) -> (i32, i32) {
    %c0_i32 = arith.constant 0 : i32
    %c0_i32_0 = arith.constant 0 : i32
    return %arg0, %c0_i32 : i32, i32
  }
}

</mosaic_0001>

<bundles_post_ra>
// kernel: tpu_custom_call.1
= control target key start
LH: loop header
LB: loop body
LE: loop exit
PB: predicated region body
PF: predicated region fallthrough
CT: control target
= control target key end

     0   :  { %12 = vsyncpa [#allocation3], 0  ;;  %vm37_vm0 = vcmask 261120   ;;  %vm155_vm1 = vcmask 1041408   ;;  %vm157_vm2 = vcmask 1043458   ;;  %vm160_vm3 = vcmask 1045508   ;;  %s622_s0 = inlined_call_operand.vmem [shape: f32[2,32], index: 0, kind: input, shape index: {}]   ;;  %s623_s1 = inlined_call_operand.vmem [shape: f32[2,256], index: 1, kind: input, shape index: {}]   ;;  %s624_s2 = inlined_call_operand.vmem [shape: f32[32,32], index: 2, kind: input, shape index: {}]   ;;  %s625_s3 = inlined_call_operand.vmem [shape: f32[1,32], index: 3, kind: input, shape index: {}]   ;;  %s626_s4 = inlined_call_operand.vmem [shape: f32[32,256], index: 4, kind: input, shape index: {}]   ;;  %s627_s5 = inlined_call_operand.vmem [shape: f32[1,32], index: 5, kind: input, shape index: {}]   ;;  %s628_s6 = inlined_call_operand.vmem [shape: f32[256,8], index: 6, kind: input, shape index: {}]   ;;  %s629_s7 = inlined_call_operand.hbm [shape: f32[2,8], index: 7, kind: output, shape index: {}]  }
   0x1   :  { %v32_v0 = vld [vmem:[%s624_s2 + $0x18] sm:$0xff]  ;;  %v31_v1 = vld [vmem:[%s624_s2 + $0x10] sm:$0xff]  ;;  %v30_v2 = vld [vmem:[%s624_s2 + $0x8] sm:$0xff]  ;;  %vm163_vm4 = vcmask 1045504   ;;  %vm298_vm5 = vcmask 64512  }
   0x2   :  { %56 = vmatpush.msra.mxu1 %v32_v0  ;;  %v76_v3 = vld [vmem:[%s626_s4 + $0x38] sm:$0xff]  ;;  %v29_v4 = vld [vmem:[%s624_s2] sm:$0xff]  ;;  %v75_v6 = vld [vmem:[%s626_s4 + $0x30] sm:$0xff] }
   0x3   :  { %118 = vmatpush.msra.mxu2 %v76_v3  ;;  %v27_v5 = vld [vmem:[%s622_s0] sm:$0xff]  ;;  %v28_v7 = vld [vmem:[%s622_s0 + $0x8] sm:$0xff]  ;;  %v71_v10 = vld [vmem:[%s626_s4 + $0x10] sm:$0xff] }
   0x4   :  { %57 = vmatpush.msra.mxu1 %v31_v1  ;;  %v73_v8 = vld [vmem:[%s626_s4 + $0x20] sm:$0xff]  ;;  %v74_v9 = vld [vmem:[%s626_s4 + $0x28] sm:$0xff]  ;;  %v72_v11 = vld [vmem:[%s626_s4 + $0x18] sm:$0xff] }
   0x5   :  { %119 = vmatpush.msra.mxu2 %v74_v9  ;;  %v69_v12 = vld [vmem:[%s626_s4] sm:$0xff]  ;;  %v70_v13 = vld [vmem:[%s626_s4 + $0x8] sm:$0xff]  ;;  %v204_v14 = vld [vmem:[%s628_s6 + $0x78] sm:$0xff] }
   0x6   :  { %58 = vmatpush.msra.mxu1 %v30_v2  ;;  %v220_v15 = vld [vmem:[%s628_s6 + $0xf8] sm:$0xff]  ;;  %v203_v16 = vld [vmem:[%s628_s6 + $0x70] sm:$0xff]  ;;  %252 = vmatpush.msra.mxu3 %v204_v14  ;;  %v350_v18 = vld [vmem:[%s625_s3] ss:$0 sm:$0xff] }
   0x7   :  { %120 = vmatpush.msra.mxu2 %v72_v11  ;;  %275 = vmatpush.msra.mxu0 %v220_v15  ;;  %v219_v17 = vld [vmem:[%s628_s6 + $0xf0] sm:$0xff]  ;;  %v351_v21 = vld [vmem:[%s627_s5] ss:$0 sm:$0xff]  ;;  %v202_v30 = vld [vmem:[%s628_s6 + $0x68] sm:$0xff] }
   0x8   :  { %59 = vmatpush.msra.mxu1 %v29_v4  ;;  %253 = vmatpush.msra.mxu3 %v203_v16  ;;  %v218_v31 = vld [vmem:[%s628_s6 + $0xe8] sm:$0xff]  ;;  %v201_v32 = vld [vmem:[%s628_s6 + $0x60] sm:$0xff]  ;;  %v200_v34 = vld [vmem:[%s628_s6 + $0x58] sm:$0xff] }
   0x9   :  { %341 = vmatmul.msk.f32.vlgmr.msra.gmra.mxu1 %vm37_vm0, %v27_v5  ;;  %121 = vmatpush.msra.mxu2 %v70_v13  ;;  %v217_v33 = vld [vmem:[%s628_s6 + $0xe0] sm:$0xff]  ;;  %v216_v35 = vld [vmem:[%s628_s6 + $0xd8] sm:$0xff]  ;;  %v199_v36 = vld [vmem:[%s628_s6 + $0x50] sm:$0xff] }
   0xa   :  { %95 = vmatpush.msrb.mxu1 %v75_v6  ;;  %276 = vmatpush.msra.mxu0 %v219_v17  ;;  %v215_v37 = vld [vmem:[%s628_s6 + $0xd0] sm:$0xff]  ;;  %v198_v38 = vld [vmem:[%s628_s6 + $0x48] sm:$0xff]  ;;  %v197_v40 = vld [vmem:[%s628_s6 + $0x40] sm:$0xff] }
   0xb   :  { %254 = vmatpush.msra.mxu3 %v202_v30  ;;  %v214_v39 = vld [vmem:[%s628_s6 + $0xc8] sm:$0xff]  ;;  %v213_v41 = vld [vmem:[%s628_s6 + $0xc0] sm:$0xff]  ;;  %v196_v42 = vld [vmem:[%s628_s6 + $0x38] sm:$0xff] }
   0xc   :  { %96 = vmatpush.msrb.mxu1 %v73_v8  ;;  %277 = vmatpush.msra.mxu0 %v218_v31  ;;  %v212_v43 = vld [vmem:[%s628_s6 + $0xb8] sm:$0xff]  ;;  %v195_v44 = vld [vmem:[%s628_s6 + $0x30] sm:$0xff]  ;;  %v194_v46 = vld [vmem:[%s628_s6 + $0x28] sm:$0xff] }
   0xd   :  { %255 = vmatpush.msra.mxu3 %v201_v32  ;;  %v211_v45 = vld [vmem:[%s628_s6 + $0xb0] sm:$0xff]  ;;  %v210_v47 = vld [vmem:[%s628_s6 + $0xa8] sm:$0xff]  ;;  %v193_v48 = vld [vmem:[%s628_s6 + $0x20] sm:$0xff] }
   0xe   :  { %97 = vmatpush.msrb.mxu1 %v71_v10  ;;  %278 = vmatpush.msra.mxu0 %v217_v33  ;;  %v209_v49 = vld [vmem:[%s628_s6 + $0xa0] sm:$0xff]  ;;  %v192_v50 = vld [vmem:[%s628_s6 + $0x18] sm:$0xff]  ;;  %v191_v52 = vld [vmem:[%s628_s6 + $0x10] sm:$0xff] }
   0xf   :  { %256 = vmatpush.msra.mxu3 %v200_v34  ;;  %v208_v51 = vld [vmem:[%s628_s6 + $0x98] sm:$0xff]  ;;  %v207_v53 = vld [vmem:[%s628_s6 + $0x90] sm:$0xff]  ;;  %v190_v54 = vld [vmem:[%s628_s6 + $0x8] sm:$0xff] }
  0x10   :  { %98 = vmatpush.msrb.mxu1 %v69_v12  ;;  %279 = vmatpush.msra.mxu0 %v216_v35  ;;  %v206_v55 = vld [vmem:[%s628_s6 + $0x88] sm:$0xff]  ;;  %v189_v56 = vld [vmem:[%s628_s6] sm:$0xff]  ;;  %v145_v13 = vld [vmem:[%s623_s1 + $0x10] sm:$0xf] }
  0x11   :  { %342 = vmatmul.msk.f32.gmra.mxu1 %vm37_vm0, %v28_v7  ;;  %257 = vmatpush.msra.mxu3 %v199_v36  ;;  %v205_v57 = vld [vmem:[%s628_s6 + $0x80] sm:$0xff]  ;;  %v143_v63 = vld [vmem:[%s623_s1 + $0x8] sm:$0xf]  ;;  %v144_v0 = vld [vmem:[%s623_s1 + $0xc] sm:$0xf] }
  0x12   :  { %280 = vmatpush.msra.mxu0 %v215_v37  ;;  %v141_v60 = vld [vmem:[%s623_s1] sm:$0xf]  ;;  %v142_v62 = vld [vmem:[%s623_s1 + $0x4] sm:$0xf]  ;;  %v146_v16 = vld [vmem:[%s623_s1 + $0x14] sm:$0xf] }
  0x13   :  { %258 = vmatpush.msra.mxu3 %v198_v38  ;;  %v147_v17 = vld [vmem:[%s623_s1 + $0x18] sm:$0xf] }
  0x14   :  { %281 = vmatpush.msra.mxu0 %v214_v39 }
  0x15   :  { %259 = vmatpush.msra.mxu3 %v197_v40 }
  0x16   :  { %282 = vmatpush.msra.mxu0 %v213_v41 }
  0x17   :  { %260 = vmatpush.msra.mxu3 %v196_v42 }
  0x18   :  { %283 = vmatpush.msra.mxu0 %v212_v43 }
  0x19   :  { %261 = vmatpush.msra.mxu3 %v195_v44 }
  0x1a   :  { %284 = vmatpush.msra.mxu0 %v211_v45 }
  0x1b   :  { %262 = vmatpush.msra.mxu3 %v194_v46 }
  0x1c   :  { %285 = vmatpush.msra.mxu0 %v210_v47 }
  0x1d   :  { %263 = vmatpush.msra.mxu3 %v193_v48 }
  0x1e   :  { %286 = vmatpush.msra.mxu0 %v209_v49 }
  0x1f   :  { %264 = vmatpush.msra.mxu3 %v192_v50 }
  0x20   :  { %287 = vmatpush.msra.mxu0 %v208_v51 }
  0x21   :  { %265 = vmatpush.msra.mxu3 %v191_v52 }
  0x22   :  { %288 = vmatpush.msra.mxu0 %v207_v53 }
  0x23   :  { %266 = vmatpush.msra.mxu3 %v190_v54 }
  0x24   :  { %289 = vmatpush.msra.mxu0 %v206_v55 }
  0x25   :  { %267 = vmatpush.msra.mxu3 %v189_v56 }
  0x26   :  { %290 = vmatpush.msra.mxu0 %v205_v57 }
  0x86   :  { %v61_v19 = vpop.f32.mrf.mxu1 }
  0x87   :  { %v62_v20 = vadd.f32 %v350_v18, %v61_v19 }
  0x89   :  { %v67_v22 = vmul.f32 0.17677669, %v62_v20 }
  0x8b   :  { %343 = vmatmul.msk.f32.vlgmr.msrb.gmra.mxu1 %vm37_vm0, %v67_v22  ;;  %345 = vmatmul.msk.f32.vlgmr.msra.gmra.mxu2 %vm37_vm0, %v67_v22  ;;  %v133_v23 = vmul.f32 %v351_v21, %v67_v22 }
  0x8d   :  { %v135_v24 = vsel %vm37_vm0, %v133_v23, 0.0 }
  0x8e   :  { %v64_v25 = vpop.f32.mrf.mxu1  ;;  %136 = vadd.xlane.f32.xlu0 %v135_v24 }
  0x8f   :  { %v65_v26 = vadd.f32 %v350_v18, %v64_v25  ;;  %v148_v18 = vld [vmem:[%s623_s1 + $0x1c] sm:$0xf] }
  0x91   :  { %v68_v27 = vmul.f32 0.17677669, %v65_v26 }
  0x93   :  { %344 = vmatmul.msk.f32.gmra.mxu1 %vm37_vm0, %v68_v27  ;;  %346 = vmatmul.msk.f32.gmra.mxu2 %vm37_vm0, %v68_v27  ;;  %v134_v28 = vmul.f32 %v351_v21, %v68_v27 }
  0x95   :  { %v138_v29 = vsel %vm37_vm0, %v134_v28, 0.0 }
  0x96   :  { %139 = vadd.xlane.f32.xlu0 %v138_v29 }
 0x101   :  { %v137_v34 = vpop.xlane.xlu0 %136 }
 0x108   :  { %v100_v58 = vpop.f32.mrf.mxu1 }
 0x109   :  { %v140_v40 = vpop.xlane.xlu0 %139 }
 0x10e   :  { %v123_v59 = vpop.f32.mrf.mxu2 }
 0x10f   :  { %v153_v61 = vrot.slane %v123_v59, 6 }
 0x110   :  { %v103_v15 = vpop.f32.mrf.mxu1 }
 0x111   :  { %v156_v1 = vsel %vm155_vm1, %v100_v58, %v153_v61  ;;  %v158_v2 = vsel %vm157_vm2, %v100_v58, %v153_v61  ;;  %v161_v3 = vsel %vm160_vm3, %v100_v58, %v153_v61  ;;  %v164_v4 = vsel %vm163_vm4, %v153_v61, %v100_v58 }
 0x112   :  { %v159_v5 = vrot.slane %v158_v2, 2  ;;  %v162_v6 = vrot.slane %v161_v3, 4  ;;  %v165_v7 = vrot.slane %v164_v4, 6  ;;  %v181_v8 = vmul.f32 %v156_v1, %v141_v60 }
 0x114   :  { %v182_v9 = vmul.f32 %v159_v5, %v142_v62  ;;  %v183_v10 = vmul.f32 %v162_v6, %v143_v63  ;;  %v184_v11 = vmul.f32 %v165_v7, %v144_v0  ;;  %229 = vst [vmem:[#allocation1] ss:$4 sm:$0xff] %v181_v8 }
 0x116   :  { %231 = vst [vmem:[#allocation1 + $0x1] ss:$4 sm:$0xff] %v182_v9  ;;  %v126_v12 = vpop.f32.mrf.mxu2 }
 0x117   :  { %233 = vst [vmem:[#allocation1 + $0x2] ss:$4 sm:$0xff] %v183_v10  ;;  %v154_v14 = vrot.slane %v126_v12, 6 }
 0x118   :  { %235 = vst [vmem:[#allocation1 + $0x3] ss:$4 sm:$0xff] %v184_v11 }
 0x119   :  { %v166_v19 = vsel %vm155_vm1, %v103_v15, %v154_v14  ;;  %v167_v20 = vsel %vm157_vm2, %v103_v15, %v154_v14  ;;  %v169_v21 = vsel %vm160_vm3, %v103_v15, %v154_v14  ;;  %v171_v22 = vsel %vm163_vm4, %v154_v14, %v103_v15 }
 0x11a   :  { %v168_v23 = vrot.slane %v167_v20, 2  ;;  %v170_v24 = vrot.slane %v169_v21, 4  ;;  %v172_v25 = vrot.slane %v171_v22, 6  ;;  %v185_v26 = vmul.f32 %v166_v19, %v145_v13 }
 0x11c   :  { %v186_v27 = vmul.f32 %v168_v23, %v146_v16  ;;  %v187_v28 = vmul.f32 %v170_v24, %v147_v17  ;;  %v188_v29 = vmul.f32 %v172_v25, %v148_v18  ;;  %237 = vst [vmem:[#allocation1 + $0x20] ss:$4 sm:$0xff] %v185_v26 }
 0x11e   :  { %239 = vst [vmem:[#allocation1 + $0x21] ss:$4 sm:$0xff] %v186_v27 }
 0x11f   :  { %241 = vst [vmem:[#allocation1 + $0x22] ss:$4 sm:$0xff] %v187_v28  ;;  %v244_v30 = vld.sshfl [vmem:[#allocation1] sm:$0xff pattern:$0x73625140] }
 0x120   :  { %243 = vst [vmem:[#allocation1 + $0x23] ss:$4 sm:$0xff] %v188_v29  ;;  %268 = vmatmul.f32.vlgmr.msra.gmra.mxu3 %v244_v30  ;;  %v245_v31 = vld.sshfl [vmem:[#allocation1 + $0x8] sm:$0xff pattern:$0x73625140] }
 0x121   :  { %291 = vmatmul.f32.vlgmr.msra.gmra.mxu0 %v245_v31 }
 0x127   :  { %v246_v32 = vld.sshfl [vmem:[#allocation1 + $0x20] sm:$0xff pattern:$0x73625140]  ;;  %v247_v33 = vld.sshfl [vmem:[#allocation1 + $0x28] sm:$0xff pattern:$0x73625140] }
 0x128   :  { %271 = vmatmul.f32.gmra.mxu3 %v246_v32 }
 0x129   :  { %294 = vmatmul.f32.gmra.mxu0 %v247_v33 }
 0x19e   :  { %v292_v35 = vpop.f32.mrf.mxu0 }
 0x1a3   :  { %v269_v36 = vpop.f32.mrf.mxu3 }
 0x1a4   :  { %v270_v37 = vadd.f32 %v269_v36, %v137_v34 }
 0x1a6   :  { %v293_v38 = vadd.f32 %v292_v35, %v270_v37  ;;  %v295_v43 = vpop.f32.mrf.mxu0 }
 0x1a8   :  { %v299_v39 = vsel %vm298_vm5, %v293_v38, -inf }
 0x1a9   :  { %300 = vmax.xlane.f32.xlu1 %v299_v39 }
 0x1ab   :  { %v272_v41 = vpop.f32.mrf.mxu3 }
 0x1ac   :  { %v273_v42 = vadd.f32 %v272_v41, %v140_v40 }
 0x1ae   :  { %v296_v44 = vadd.f32 %v295_v43, %v273_v42 }
 0x1b0   :  { %v302_v45 = vsel %vm298_vm5, %v296_v44, -inf }
 0x1b1   :  { %303 = vmax.xlane.f32.xlu1 %v302_v45 }
 0x21c   :  { %v301_v46 = vpop.xlane.xlu1 %300 }
 0x21d   :  { %v305_v47 = vsub.f32 %v293_v38, %v301_v46 }
 0x21f   :  { %v307_v48 = vmul.f32 1.442695, %v305_v47 }
 0x221   :  { %352 = vpow2.f32 %v307_v48 }
 0x224   :  { %v304_v49 = vpop.xlane.xlu1 %303 }
 0x225   :  { %v306_v50 = vsub.f32 %v296_v44, %v304_v49 }
 0x227   :  { %v353_v51 = vpop.eup %352  ;;  %v309_v52 = vmul.f32 1.442695, %v306_v50 }
 0x228   :  { %v311_v53 = vsel %vm298_vm5, %v353_v51, 0.0 }
 0x229   :  { %354 = vpow2.f32 %v309_v52  ;;  %312 = vadd.xlane.f32.xlu2 %v311_v53 }
 0x22f   :  { %v355_v54 = vpop.eup %354 }
 0x230   :  { %v314_v55 = vsel %vm298_vm5, %v355_v54, 0.0 }
 0x231   :  { %315 = vadd.xlane.f32.xlu2 %v314_v55 }
 0x29c   :  { %v313_v56 = vpop.xlane.xlu2 %312 }
 0x29d   :  { %356 = vrcp.f32 %v313_v56 }
 0x2a3   :  { %v357_v57 = vpop.eup %356 }
 0x2a4   :  { %v319_v58 = vmul.f32 %v357_v57, %v353_v51  ;;  %v316_v59 = vpop.xlane.xlu2 %315 }
 0x2a5   :  { %358 = vrcp.f32 %v316_v59 }
 0x2a6   :  { %321 = vst.msk [vmem:[#allocation2] sm:$0xff] %vm298_vm5, %v319_v58 }
 0x2ab   :  { %v359_v60 = vpop.eup %358 }
 0x2ac   :  { %v320_v61 = vmul.f32 %v359_v60, %v355_v54 }
 0x2ae   :  { %322 = vst.msk [vmem:[#allocation2 + $0x8] sm:$0xff] %vm298_vm5, %v320_v61 }
 0x2af   :  { %326 = vsyncadd [#allocation3], 224  ;;  %s329_s27 = sshll.u32 %s629_s7, 4  ;;  %s386_s28 = smov [#allocation2]   ;;  %s330_s27 = int_to_ptr.hbm [resolvable:$true] %s329_s27 }
 0x2b0   :  { %s327_s29 = sshll.u32 %s386_s28, 4  ;;  %s387_s30 = smov 32   ;;  %s328_s29 = int_to_ptr.vmem [resolvable:$true] %s327_s29 }
 0x2b1   :  { %s388_s8 = smov 2  }
 0x2b2   :  { %335 = dma.vmem_to_hbm [thread:$0]  %s328_s29, 32, %s330_s27, [#allocation3], %s387_s30, %s387_s30, %s388_s8  }
 0x2b3   :  { %384 = dma.done.wait [#allocation3], 256  }
 0x2b4   :  { %385 = vsyncadd [#allocation3], 4294967040 }
 0x2b5   :  { %340 = vsyncpa [#allocation3], 1 }

</bundles_post_ra>
